<compile_context>
chip_gen: v7x
topology: tpu7x:2x2x1
jax: 0.10.0
libtpu: 0.0.40
codegen_flags: <defaults>
</compile_context>

<pallas_src>
import math
import functools

import jax
import jax.numpy as jnp
from jax.experimental import pallas as pl
from jax.experimental.pallas import tpu as pltpu


# --------------------- filter-bank generation (plain JAX glue) ---------------------
# rot_img is not defined in the module source; standard reference implementation
# (F.affine_grid + F.grid_sample, bilinear, zeros padding, align_corners=False).

def _grid_sample_bilinear_zeros(img, ix, iy):
    """img: (N, C, H, W); ix/iy: (Ho, Wo) pixel coords. Bilinear, zero padding."""
    H, W = img.shape[-2], img.shape[-1]
    x0 = jnp.floor(ix)
    y0 = jnp.floor(iy)
    x1 = x0 + 1.0
    y1 = y0 + 1.0
    wx1 = ix - x0
    wx0 = 1.0 - wx1
    wy1 = iy - y0
    wy0 = 1.0 - wy1

    def gather(yc, xc):
        valid = (xc >= 0) & (xc <= W - 1) & (yc >= 0) & (yc <= H - 1)
        xi = jnp.clip(xc, 0, W - 1).astype(jnp.int32)
        yi = jnp.clip(yc, 0, H - 1).astype(jnp.int32)
        vals = img[:, :, yi, xi]                       # (N, C, Ho, Wo)
        return vals * valid.astype(img.dtype)

    return (gather(y0, x0) * (wy0 * wx0)
            + gather(y0, x1) * (wy0 * wx1)
            + gather(y1, x0) * (wy1 * wx0)
            + gather(y1, x1) * (wy1 * wx1))


def rot_img(x, theta):
    """JAX port of rot_img(x, theta): spatially rotate (N, C, K, K) images."""
    _, _, H, W = x.shape
    cos = jnp.cos(jnp.asarray(theta, x.dtype))
    sin = jnp.sin(jnp.asarray(theta, x.dtype))
    # affine_grid base coords (align_corners=False): c_i = (2*i + 1)/S - 1
    ys = (2.0 * jnp.arange(H, dtype=x.dtype) + 1.0) / H - 1.0
    xs = (2.0 * jnp.arange(W, dtype=x.dtype) + 1.0) / W - 1.0
    gx, gy = jnp.meshgrid(xs, ys)                      # (H, W)
    sx = cos * gx - sin * gy                           # theta row [cos, -sin, 0]
    sy = sin * gx + cos * gy                           # theta row [sin,  cos, 0]
    ix = ((sx + 1.0) * W - 1.0) / 2.0                  # un-normalize (align_corners=False)
    iy = ((sy + 1.0) * H - 1.0) / 2.0
    return _grid_sample_bilinear_zeros(x, ix, iy)


def generate_filter_bank(kernel, group_order):
    """kernel: (OC, IC, G, K, K) -> filter bank (OC, G, IC, G, K, K)."""
    OC, IC, G, K, _ = kernel.shape
    filt = kernel.reshape(OC * IC, G, K, K)
    banks = []
    for i in range(group_order):
        rotated = rot_img(filt, -math.pi * 2.0 / group_order * i)
        shifted = jnp.roll(jnp.arange(group_order), shift=i)
        banks.append(rotated[:, shifted].reshape(OC, IC, G, K, K))
    fb = jnp.stack(banks, axis=0)                      # (G, OC, IC, G, K, K)
    return jnp.swapaxes(fb, 0, 1)                      # (OC, G, IC, G, K, K)


# ------------------------------ Pallas conv kernel ------------------------------

def _gconv_matmul_kernel(w_ref, cols_ref, o_ref, *, activation):
    # w_ref   : (Cout, KKCin)   resident weight (same block across the grid)
    # cols_ref: (1, KKCin, NT)  im2col tile; NT (spatial) sits on the 128-lane axis
    # o_ref   : (1, Cout, NT)   lane-dense output tile (unmasked stores)
    acc = jnp.dot(w_ref[...], cols_ref[0],
                  preferred_element_type=jnp.float32)          # (Cout, NT) on MXU
    if activation:
        acc = jnp.where(acc >= 0, acc, 0.01 * acc)             # F.leaky_relu default slope
    o_ref[0, :, :] = acc.astype(o_ref.dtype)


def _pick_lane_tile(hw_pad, batch, kkcin, cout, itemsize,
                    max_tile=4096, vmem_budget=12 << 20):
    """Largest lane tile (multiple of 128, dividing hw_pad) whose double-buffered
    cols/out tiles + resident weight stay inside a conservative VMEM budget,
    preferring tiles that still give a few grid steps for pipelining /
    megacore sharding."""
    divs = [t for t in range(128, min(hw_pad, max_tile) + 1, 128)
            if hw_pad % t == 0]
    if not divs:
        divs = [hw_pad]

    def fits(t):
        cols_bytes = 2 * kkcin * t * itemsize      # double-buffered input tile
        out_bytes = 2 * cout * t * itemsize        # double-buffered output tile
        w_bytes = cout * kkcin * itemsize          # resident weight
        return cols_bytes + out_bytes + w_bytes <= vmem_budget

    ok_budget = [t for t in divs if fits(t)] or [min(divs)]
    for min_steps in (8, 4, 2, 1):
        ok = [t for t in ok_budget if batch * (hw_pad // t) >= min_steps]
        if ok:
            return max(ok)
    return min(ok_budget)


def rui_group_conv_cn(x, kernel, activation=True, compute_dtype=None):
    """x: (B, in_channels, group_order, H, W); kernel: (OC, IC, G, K, K).
    Returns (B, out_channels, group_order, Hout, Wout)."""
    B, IC, G, H, W = x.shape
    OC = kernel.shape[0]
    K = kernel.shape[-1]
    pad = (K - 1) // 2
    Cin, Cout = IC * G, OC * G
    Hout = H + 2 * pad - K + 1                                 # == H for odd K
    Wout = W + 2 * pad - K + 1
    HW = Hout * Wout
    HW_pad = ((HW + 127) // 128) * 128                         # lane-dense spatial axis
    KKCin = K * K * Cin

    # ---- parameter / layout glue in plain JAX ----
    fb = generate_filter_bank(kernel, G)                       # (OC, G, IC, G, K, K)
    w_oihw = fb.reshape(Cout, Cin, K, K)
    # (Cout, K*K*Cin) with contraction index j = (ky*K + kx)*Cin + cin
    w2 = jnp.transpose(w_oihw, (0, 2, 3, 1)).reshape(Cout, KKCin)

    x_nchw = x.reshape(B, Cin, H, W)
    xp = jnp.pad(x_nchw, ((0, 0), (0, 0), (pad, pad), (pad, pad)))
    # im2col: (B, K*K*Cin, Hout*Wout), same j ordering as w2 (halo baked in,
    # so the kernel needs no unaligned window slices / halo handling).
    patches = jnp.stack(
        [xp[:, :, ky:ky + Hout, kx:kx + Wout]
         for ky in range(K) for kx in range(K)],
        axis=1)                                                # (B, K*K, Cin, Hout, Wout)
    cols = patches.reshape(B, KKCin, HW)
    if HW_pad != HW:
        cols = jnp.pad(cols, ((0, 0), (0, 0), (0, HW_pad - HW)))

    if compute_dtype is not None:
        # e.g. jnp.bfloat16 on v6e/v7x for MXU peak rate; f32 accumulation kept.
        w2 = w2.astype(compute_dtype)
        cols = cols.astype(compute_dtype)

    itemsize = jnp.dtype(cols.dtype).itemsize
    NT = _pick_lane_tile(HW_pad, B, KKCin, Cout, itemsize)
    grid = (B, HW_pad // NT)

    cost = pl.CostEstimate(
        flops=2 * B * HW_pad * KKCin * Cout,
        transcendentals=0,
        bytes_accessed=(cols.size * itemsize
                        + w2.size * itemsize
                        + B * Cout * HW_pad * jnp.dtype(x.dtype).itemsize))

    out = pl.pallas_call(
        functools.partial(_gconv_matmul_kernel, activation=activation),
        out_shape=jax.ShapeDtypeStruct((B, Cout, HW_pad), x.dtype),
        grid_spec=pltpu.PrefetchScalarGridSpec(
            num_scalar_prefetch=0,
            grid=grid,
            in_specs=[
                pl.BlockSpec((Cout, KKCin), lambda b, t: (0, 0)),      # resident weight
                pl.BlockSpec((1, KKCin, NT), lambda b, t: (b, 0, t)),  # im2col tile
            ],
            out_specs=pl.BlockSpec((1, Cout, NT), lambda b, t: (b, 0, t)),
        ),
        compiler_params=pltpu.CompilerParams(
            dimension_semantics=("parallel", "parallel")),
        cost_estimate=cost,
    )(w2, cols)

    # layout already matches the torch output: channel index = oc*G + g
    out = out[:, :, :HW] if HW_pad != HW else out
    return out.reshape(B, OC, G, Hout, Wout)


if __name__ == "__main__":
    B, IC, OC, G, K, H, W = 2, 4, 4, 4, 3, 16, 16

    key = jax.random.PRNGKey(0)
    kx_key, kw_key = jax.random.split(key)
    x = jax.random.normal(kx_key, (B, IC, G, H, W), jnp.float32)

    # kaiming_uniform_(a=sqrt(5)) on (OC, IC, G, K, K):
    # fan_in = IC * G * K * K, bound = sqrt(1/fan_in)
    fan_in = IC * G * K * K
    bound = math.sqrt(1.0 / fan_in)
    kernel = jax.random.uniform(kw_key, (OC, IC, G, K, K), jnp.float32,
                                minval=-bound, maxval=bound)

    out = rui_group_conv_cn(x, kernel, activation=True)
    jax.block_until_ready(out)
    assert out.shape == (B, OC, G, H, W) and out.dtype == jnp.float32

    # sanity check against a pure-JAX reference conv (loose tol: default-precision MXU)
    fb = generate_filter_bank(kernel, G)
    w_ref = fb.reshape(OC * G, IC * G, K, K)
    ref = jax.lax.conv_general_dilated(
        x.reshape(B, IC * G, H, W), w_ref, window_strides=(1, 1),
        padding=[((K - 1) // 2, (K - 1) // 2)] * 2,
        dimension_numbers=("NCHW", "OIHW", "NCHW"))
    ref = jnp.where(ref >= 0, ref, 0.01 * ref).reshape(B, OC, G, H, W)
    assert jnp.allclose(out, ref, rtol=5e-2, atol=5e-2)

    print("KERNEL_OK")
</pallas_src>

<mosaic_0001>
module attributes {stable_mosaic.version = 11 : i64} {
  func.func @_gconv_matmul_kernel(%arg0: i32, %arg1: i32, %arg2: memref<16x144xf32, #tpu.memory_space<vmem>>, %arg3: memref<1x144x128xf32, #tpu.memory_space<vmem>>, %arg4: memref<1x16x128xf32, #tpu.memory_space<vmem>>) attributes {dimension_semantics = [#tpu.dimension_semantics<parallel>, #tpu.dimension_semantics<parallel>], iteration_bounds = array<i64: 2, 2>, scalar_prefetch = 0 : i64, scratch_operands = 0 : i64, tpu.core_type = #tpu.core_type<tc>, window_params = [{pipeline_mode = #tpu.pipeline_mode<synchronous>, transform_indices = @transform_0, window_bounds = array<i64: 16, 144>}, {transform_indices = @transform_1, window_bounds = array<i64: 1, 144, 128>}, {transform_indices = @transform_2, window_bounds = array<i64: 1, 16, 128>}]} {
    %c0 = arith.constant 0 : index
    %c0_0 = arith.constant 0 : index
    %0 = vector.load %arg2[%c0, %c0_0] : memref<16x144xf32, #tpu.memory_space<vmem>>, vector<16x144xf32>
    %c0_1 = arith.constant 0 : index
    %c0_2 = arith.constant 0 : index
    %c0_3 = arith.constant 0 : index
    %1 = vector.load %arg3[%c0_1, %c0_2, %c0_3] : memref<1x144x128xf32, #tpu.memory_space<vmem>>, vector<1x144x128xf32>
    %2 = vector.shape_cast %1 : vector<1x144x128xf32> to vector<144x128xf32>
    %cst = arith.constant dense<0.000000e+00> : vector<16x128xf32>
    %3 = tpu.matmul %0, %2, %cst {dimension_numbers = #tpu.dot_dimension_numbers<[1], [0], [0], [1], [0, 0, 1, 1], [], []>} : vector<16x144xf32>, vector<144x128xf32>, vector<16x128xf32> -> vector<16x128xf32>
    %cst_4 = arith.constant 0.000000e+00 : f32
    %4 = vector.broadcast %cst_4 : f32 to vector<16x128xf32>
    %5 = arith.cmpf oge, %3, %4 : vector<16x128xf32>
    %cst_5 = arith.constant 0.00999999977 : f32
    %6 = vector.broadcast %cst_5 : f32 to vector<16x128xf32>
    %7 = arith.mulf %6, %3 : vector<16x128xf32>
    %8 = arith.select %5, %3, %7 : vector<16x128xi1>, vector<16x128xf32>
    %c0_6 = arith.constant 0 : index
    %c0_7 = arith.constant 0 : index
    %c0_8 = arith.constant 0 : index
    %9 = vector.load %arg4[%c0_6, %c0_7, %c0_8] : memref<1x16x128xf32, #tpu.memory_space<vmem>>, vector<1x16x128xf32>
    %10 = vector.shape_cast %9 : vector<1x16x128xf32> to vector<16x128xf32>
    %11 = vector.shape_cast %8 : vector<16x128xf32> to vector<1x16x128xf32>
    tpu.vector_store %arg4[%c0_6, %c0_7, %c0_8], %11 {strides = array<i32>} : memref<1x16x128xf32, #tpu.memory_space<vmem>>, vector<1x16x128xf32>,
    return
  }
  func.func @transform_0(%arg0: i32, %arg1: i32) -> (i32, i32) {
    %c0_i32 = arith.constant 0 : i32
    %c0_i32_0 = arith.constant 0 : i32
    %c0_i32_1 = arith.constant 0 : i32
    return %c0_i32, %c0_i32_0 : i32, i32
  }
  func.func @transform_1(%arg0: i32, %arg1: i32) -> (i32, i32, i32) {
    %c0_i32 = arith.constant 0 : i32
    %c0_i32_0 = arith.constant 0 : i32
    return %arg0, %c0_i32, %arg1 : i32, i32, i32
  }
  func.func @transform_2(%arg0: i32, %arg1: i32) -> (i32, i32, i32) {
    %c0_i32 = arith.constant 0 : i32
    %c0_i32_0 = arith.constant 0 : i32
    return %arg0, %c0_i32, %arg1 : i32, i32, i32
  }
}

</mosaic_0001>

<bundles_post_ra>
// kernel: tpu_custom_call.1
= control target key start
LH: loop header
LB: loop body
LE: loop exit
PB: predicated region body
PF: predicated region fallthrough
CT: control target
= control target key end

     0   :  { %s1049_s0 = inlined_call_operand.hbm [shape: f32[16,144], index: 0, kind: input, shape index: {}]   ;;  %s1050_s1 = inlined_call_operand.hbm [shape: f32[2,144,256], index: 1, kind: input, shape index: {}]   ;;  %s1051_s2 = inlined_call_operand.hbm [shape: f32[2,16,256], index: 2, kind: output, shape index: {}]  }
   0x1   :  { %1061 = sst [smem:[#allocation13_spill]] %s1049_s0 }
   0x2   :  { %7 = vsyncpa [#allocation3], 0 }
   0x3   :  { %8 = vsyncpa [#allocation6], 0 }
   0x4   :  { %10 = vsyncpa [#allocation6 + $0x1], 0 }
   0x5   :  { %11 = vsyncpa [#allocation4], 0 }
   0x6   :  { %13 = vsyncpa [#allocation4 + $0x1], 0  ;;  %s770_s9 = smov 0   ;;  %s772_s10 = smov 0  }
   0x7   :  { %s774_s11 = smov 0   ;;  %s776_s12 = smov 0  }
   0x8   :  { %s778_s13 = smov 0   ;;  %s780_s14 = smov 0  }
   0x9   :  { %s782_s15 = smov 0   ;;  %s784_s16 = smov 0  }
   0xa LB: > { %s421_s17 = sadd.s32 4294967295, %s742_s16   ;;  %s422_s18 = sadd.s32 4294967294, %s742_s16   ;;  %s742_s16 = sphi %s784_s16, %s19_s16   ;;  %s738_s15 = sphi %s782_s15, %s1089_s15   ;;  %s734_s14 = sphi %s780_s14, %s1088_s14   ;;  %s730_s13 = sphi %s778_s13, %s1087_s13   ;;  %s726_s12 = sphi %s776_s12, %s1086_s12   ;;  %s722_s11 = sphi %s774_s11, %s1085_s11   ;;  %s718_s10 = sphi %s772_s10, %s1084_s10   ;;  %s714_s9 = sphi %s770_s9, %s1083_s9  }
   0xb   : > { %p68_p0 = scmp.ne.s32.totalorder %s722_s11, %s718_s10  ;;  %p69_p1 = scmp.eq.s32.totalorder %s742_s16, 0 }
   0xc   : > { %p74_p2 = scmp.ne.s32.totalorder %s718_s10, %s714_s9  ;;  %p818_p3 = scmp.eq.s32.totalorder %s421_s17, 0 }
   0xd   : > { %p100_p4 = scmp.eq.s32.totalorder %s421_s17, 3  ;;  %p822_p5 = por %p69_p1, %p68_p0 }
   0xe   : > { %s1062_s20 = scalar_select %p818_p3, 1, 0 }
   0xf   : > { %p106_p6 = scmp.eq.s32.totalorder %s422_s18, 3  ;;  %p828_p7 = por %p818_p3, %p74_p2 }
  0x10   : > { %p832_p8 = por %p100_p4, %p68_p0  ;;  %p423_p10 = scmp.ge.s32.totalorder %s742_s16, 1 }
  0x11   : > { %s1064_s22 = scalar_select %p828_p7, 1, 0 }
  0x12   : > { %s1065_s23 = scalar_select %p832_p8, 1, 0 }
  0x13   : > { %p836_p9 = por %p106_p6, %p74_p2  ;;  %p113_p11 = scmp.lt.s32.totalorder %s742_s16, 5 }
  0x14   : > { %s744_s26 = smov [#allocation2]   ;;  %p506_p0 = scmp.lt.s32.totalorder %s742_s16, 4 }
  0x15   : > { %s1066_s24 = scalar_select %p836_p9, 1, 0 }
  0x16   : > { %p842_p12 = pnand %p423_p10, %p113_p11  ;;  %s125_s27 = sshll.u32 %s744_s26, 4  ;;  %s126_s27 = int_to_ptr.vmem [resolvable:$true] %s125_s27 }
  0x17   : > { %p857_p2 = pnand %p506_p0, %p822_p5  ;;  %s1070_s0 = sld [smem:[#allocation13_spill]] }
  0x18   : > { %s1067_s25 = scalar_select %p842_p12, 1, 0 }
  0x19   : > { %p493_p13 = pneg %p842_p12 }
  0x1a   : > { %s1069_s29 = scalar_select %p857_p2, 1, 0 }
  0x1b   : > { %p851_p1 = pnand %p493_p13, %p818_p3 }
  0x1d   : > { %s582_s4 = scalar_lea.hbm %s1070_s0, 512  ;;  %p584_p6 = pneg %p851_p1 }
  0x1e   : > { %p583_p4 = scmp.ne.s32.totalorder %s1070_s0, %s582_s4  ;;  %p589_p13 = scmp.lt.u32.totalorder %s582_s4, %s1070_s0 }
  0x20   : > { %p585_p10 = pnand %p584_p6, %p583_p4 }
  0x22   : > { %p586_p11 = pneg %p585_p10 }
  0x24   : > { %p591_p5 = pnand %p589_p13, %p586_p11 }
  0x26   : > { %594 = shalt.err (!%p591_p5)
}
  0x27   : > { %s595_s17 = scalar_lea.vmem %s126_s27, 512  ;;  %p603_p7 = scmp.lt.s32.totalorder %s126_s27, %s126_s27 }
  0x28   : > { %p596_p0 = scmp.ne.s32.totalorder %s126_s27, %s595_s17  ;;  %p604_p3 = scmp.lt.s32.totalorder %s595_s17, %s595_s17 }
  0x2a   : > { %p598_p9 = pnand %p596_p0, %p584_p6  ;;  %p605_p12 = por %p604_p3, %p603_p7 }
  0x2c   : > { %p599_p8 = pneg %p598_p9 }
  0x2e   : > { %p606_p2 = pnand %p605_p12, %p599_p8 }
  0x30   : > { %609 = shalt.err (!%p606_p2)
}
  0x31   : > { %s1058_s18 = smov 256   ;;  %s746_s21 = smov 16  }
  0x32   : > { %496 = dma.hbm_to_vmem [thread:$0]  (!%p851_p1), %s1070_s0, 512, %s126_s27, [#allocation3], %s1058_s18, %s1058_s18, %s746_s21  }
  0x33   : > { %s28_s3 = sadd.s32 1, %s734_s14  ;;  %s31_s4 = sadd.s32 1, %s738_s15 }
  0x34   : > { %p29_p3 = scmp.ge.s32.totalorder %s28_s3, 2  ;;  %s139_s5 = sand.u32 1, %s722_s11  }
  0x35   : > { %s483_s6 = smul.u32 36, %s738_s15  ;;  %p1074_p12 = scmp.ne.s32.totalorder %s1069_s29, 0 }
  0x36   : > { %s1091_s3 = smov (%p29_p3, %s28_s3), 0  ;;  %s1093_s4 = smov (!%p29_p3, %s31_s4), %s738_s15 }
  0x37   : > { %1071 = sst [smem:[#allocation11_spill]] %s1091_s3  ;;  %s57_s7 = ssub.s32 %s734_s14, %s1091_s3 }
  0x38   : > { %p33_p7 = scmp.ge.s32.totalorder %s1093_s4, 2  ;;  %s482_s28 = smul.u32 144, %s139_s5 }
  0x39   : > { %s148_s8 = sadd.s32 %s734_s14, %s483_s6  ;;  %s1073_s6 = sadd.s32 1, %s722_s11 }
  0x3a   : > { %s1095_s4 = smov (%p33_p7, %s1093_s4), 0  ;;  %s426_s27 = sshll.u32 %s148_s8, 7 }
  0x3b   : > { %1072 = sst [smem:[#allocation12_spill]] %s1095_s4  ;;  %s56_s17 = ssub.s32 %s738_s15, %s1095_s4 }
  0x3c   : > { %s896_s30 = scalar_lea.hbm %s1050_s1, %s426_s27  ;;  %s58_s18 = sor.u32 %s57_s7, %s56_s17 }
  0x3d   : > { %s143_s19 = scalar_lea.vmem [#allocation5], %s482_s28  ;;  %p59_p8 = scmp.eq.s32.totalorder %s58_s18, 0 }
  0x3e   : > { %s151_s0 = sshll.u32 %s143_s19, 4  ;;  %s905_s8 = scalar_lea.sflag [#allocation6], %s139_s5  ;;  %s898_s0 = int_to_ptr.vmem [resolvable:$true] %s151_s0 }
  0x3f   : > { %s903_s3 = scalar_select %p59_p8, %s722_s11, %s1073_s6  }
  0x40   : > { %s610_s4 = scalar_lea.hbm %s896_s30, 2304  ;;  %p612_p1 = pneg %p1074_p12 }
  0x41   : > { %p611_p9 = scmp.ne.s32.totalorder %s896_s30, %s610_s4  ;;  %s615_s19 = scalar_lea.hbm %s1050_s1, 9216 }
  0x42   : > { %p616_p6 = scmp.lt.u32.totalorder %s896_s30, %s1050_s1  ;;  %p617_p10 = scmp.lt.u32.totalorder %s615_s19, %s610_s4 }
  0x43   : > { %p613_p2 = pnand %p612_p1, %p611_p9  ;;  %p619_p13 = scmp.lt.u32.totalorder %s610_s4, %s896_s30 }
  0x44   : > { %p618_p11 = por %p617_p10, %p616_p6 }
  0x45   : > { %p614_p4 = pneg %p613_p2 }
  0x46   : > { %p620_p5 = por %p619_p13, %p618_p11 }
  0x48   : > { %p621_p0 = pnand %p620_p5, %p614_p4 }
  0x4a   : > { %624 = shalt.err (!%p621_p0)
}
  0x4b   : > { %s625_s5 = scalar_lea.vmem %s898_s0, 2304  ;;  %s747_s17 = smov [#allocation5]  }
  0x4c   : > { %p626_p3 = scmp.ne.s32.totalorder %s898_s0, %s625_s5  ;;  %s630_s21 = sshll.u32 %s747_s17, 4  ;;  %s631_s21 = int_to_ptr.vmem [resolvable:$false] %s630_s21 }
  0x4d   : > { %s632_s26 = scalar_lea.vmem %s631_s21, 4608  ;;  %p633_p9 = scmp.lt.s32.totalorder %s898_s0, %s631_s21 }
  0x4e   : > { %p628_p7 = pnand %p626_p3, %p612_p1  ;;  %p634_p2 = scmp.lt.s32.totalorder %s632_s26, %s625_s5 }
  0x50   : > { %p629_p8 = pneg %p628_p7  ;;  %p635_p6 = por %p634_p2, %p633_p9 }
  0x52   : > { %p636_p10 = pnand %p635_p6, %p629_p8 }
  0x54   : > { %639 = shalt.err (!%p636_p10)
}
  0x55   : > { %s748_s4 = smov 128   ;;  %s749_s6 = smov 8  }
  0x56   : > { %s1075_s7 = smov 256   ;;  %p1076_p1 = scmp.ne.s32.totalorder %s1067_s25, 0 }
  0x57   : > { %500 = dma.hbm_to_vmem [thread:$0]  (!%p1074_p12), %s896_s30, 2304, %s898_s0, %s905_s8, %s1075_s7, %s748_s4, %s749_s6  }
  0x58   : > { %163 = sbr.rel (%p1076_p1) target bundleno = 370 (0x172), region = 28  ;;  %p1077_p4 = scmp.ne.s32.totalorder (!%p1076_p1), %s1062_s20, 0 }
  0x5f   : > { %701 = dma.done.wait (%p1077_p4), [#allocation3], 512  }
  0x60   : > { %703 = vsyncadd (%p1077_p4), [#allocation3], 4294966784  ;;  %s941_s27 = sand.u32 1, %s718_s10   ;;  %p1078_p12 = scmp.ne.s32.totalorder %s1064_s22, 0 }
  0x61   : > { %s484_s19 = smul.u32 144, %s941_s27  ;;  %s170_s18 = scalar_lea.sflag [#allocation6], %s941_s27 }
  0x63   : > { %s945_s29 = scalar_lea.vmem [#allocation5], %s484_s19 }
  0x64   : > { %705 = dma.done.wait (%p1078_p12), %s170_s18, 2304  }
  0x65   : > { %707 = vsyncadd (%p1078_p12), %s170_s18, 4294964992  ;;  %v750_v0 = vmov 0.0|0.0   ;;  %v198_v1 = vld [vmem:[%s945_s29] sm:$0xff]  ;;  %v199_v2 = vld [vmem:[%s945_s29 + $0x8] sm:$0xff]  ;;  %vm216_vm0 = vcmask 130048   ;;  %s429_s0 = sshll.u32 %s941_s27, 4 }
  0x66   : > { %437 = vmatprep.subr.bf16.mxu0 %v750_v0  ;;  %464 = vmatprep.subr.bf16.mxu1 %v750_v0  ;;  %v200_v3 = vld [vmem:[%s945_s29 + $0x10] sm:$0xff]  ;;  %v438_v4 = vpack.c.bf16 %v199_v2, %v198_v1  ;;  %v201_v5 = vld [vmem:[%s945_s29 + $0x18] sm:$0xff]  ;;  %v202_v7 = vld [vmem:[%s945_s29 + $0x20] sm:$0xff]  ;;  %s433_s20 = sshll.u32 %s730_s13, 2  ;;  %s193_s25 = scalar_lea.vmem [#allocation7], %s429_s0 }
  0x67   : > { %v441_v6 = vpack.c.bf16 %v201_v5, %v200_v3  ;;  %v203_v8 = vld [vmem:[%s945_s29 + $0x28] sm:$0xff]  ;;  %v204_v12 = vld [vmem:[%s945_s29 + $0x30] sm:$0xff]  ;;  %v205_v13 = vld [vmem:[%s945_s29 + $0x38] sm:$0xff]  ;;  %s318_s22 = sadd.s32 %s726_s12, %s433_s20  ;;  %s321_s30 = sshll.u32 %s193_s25, 4  ;;  %s990_s30 = int_to_ptr.vmem [resolvable:$true] %s321_s30 }
  0x68   : > { %439 = vmatpush1.bf16.msra.mxu0 %v438_v4  ;;  %473 = vmatpush1.bf16.msra.mxu1 %v438_v4  ;;  %v195_v9 = vld [vmem:[#allocation2 + $0x8] sm:$0xff]  ;;  %v197_v10 = vld [vmem:[#allocation2 + $0x18] sm:$0xff]  ;;  %v444_v11 = vpack.c.bf16 %v203_v8, %v202_v7  ;;  %v447_v14 = vpack.c.bf16 %v205_v13, %v204_v12  ;;  %v206_v15 = vld [vmem:[%s945_s29 + $0x40] sm:$0xff]  ;;  %s434_s8 = sshll.u32 %s318_s22, 7  ;;  %s307_s12 = scalar_lea.sflag [#allocation4], %s941_s27 }
  0x69   : > { %440 = vmatprep.subr.bf16.mxu0 %v750_v0  ;;  %465 = vmatprep.subr.bf16.mxu1 %v750_v0  ;;  %v207_v16 = vld [vmem:[%s945_s29 + $0x48] sm:$0xff]  ;;  %v208_v18 = vld [vmem:[%s945_s29 + $0x50] sm:$0xff]  ;;  %v209_v19 = vld [vmem:[%s945_s29 + $0x58] sm:$0xff]  ;;  %s995_s13 = scalar_lea.hbm %s1051_s2, %s434_s8  ;;  %s640_s17 = scalar_lea.vmem %s990_s30, 256 }
  0x6a   : > { %430 = vmatprep.mubr.msk.f32.mxu0 %vm216_vm0, %v195_v9  ;;  %431 = vmatprep.mubr.msk.f32.mxu1 %vm216_vm0, %v197_v10  ;;  %v450_v17 = vpack.c.bf16 %v207_v16, %v206_v15  ;;  %v453_v20 = vpack.c.bf16 %v209_v19, %v208_v18  ;;  %v210_v21 = vld [vmem:[%s945_s29 + $0x60] sm:$0xff]  ;;  %v211_v22 = vld [vmem:[%s945_s29 + $0x68] sm:$0xff]  ;;  %v212_v24 = vld [vmem:[%s945_s29 + $0x70] sm:$0xff]  ;;  %p641_p11 = scmp.ne.s32.totalorder %s990_s30, %s640_s17  ;;  %p1079_p13 = scmp.ne.s32.totalorder %s1065_s23, 0 }
  0x6b   : > { %v456_v23 = vpack.c.bf16 %v211_v22, %v210_v21  ;;  %v213_v25 = vld [vmem:[%s945_s29 + $0x78] sm:$0xff]  ;;  %v214_v27 = vld [vmem:[%s945_s29 + $0x80] sm:$0xff]  ;;  %v215_v28 = vld [vmem:[%s945_s29 + $0x88] sm:$0xff]  ;;  %s751_s21 = smov [#allocation7]  }
  0x6c   : > { %442 = vmatpush1.bf16.msra.mxu0 %v441_v6  ;;  %474 = vmatpush1.bf16.msra.mxu1 %v441_v6  ;;  %v459_v26 = vpack.c.bf16 %v213_v25, %v212_v24  ;;  %v462_v29 = vpack.c.bf16 %v215_v28, %v214_v27  ;;  %v194_v30 = vld [vmem:[#allocation2] sm:$0xff]  ;;  %v196_v31 = vld [vmem:[#allocation2 + $0x10] sm:$0xff]  ;;  %p642_p5 = pnand %p641_p11, %p1079_p13  ;;  %s644_s26 = sshll.u32 %s751_s21, 4  ;;  %s645_s26 = int_to_ptr.vmem [resolvable:$false] %s644_s26 }
  0x6d   : > { %443 = vmatprep.subr.bf16.mxu0 %v750_v0  ;;  %466 = vmatprep.subr.bf16.mxu1 %v750_v0  ;;  %s646_s4 = scalar_lea.vmem %s645_s26, 512  ;;  %p647_p3 = scmp.lt.s32.totalorder %s990_s30, %s645_s26 }
  0x6e   : > { %p643_p0 = pneg %p642_p5  ;;  %p648_p7 = scmp.lt.s32.totalorder %s646_s4, %s640_s17 }
  0x70   : > { %445 = vmatpush1.bf16.msra.mxu0 %v444_v11  ;;  %475 = vmatpush1.bf16.msra.mxu1 %v444_v11  ;;  %p649_p8 = por %p648_p7, %p647_p3 }
  0x71   : > { %446 = vmatprep.subr.bf16.mxu0 %v750_v0  ;;  %467 = vmatprep.subr.bf16.mxu1 %v750_v0 }
  0x72   : > { %p650_p9 = pnand %p649_p8, %p643_p0 }
  0x74   : > { %448 = vmatpush1.bf16.msra.mxu0 %v447_v14  ;;  %476 = vmatpush1.bf16.msra.mxu1 %v447_v14 }
  0x75   : > { %449 = vmatprep.subr.bf16.mxu0 %v750_v0  ;;  %468 = vmatprep.subr.bf16.mxu1 %v750_v0 }
  0x78   : > { %451 = vmatpush1.bf16.msra.mxu0 %v450_v17  ;;  %477 = vmatpush1.bf16.msra.mxu1 %v450_v17 }
  0x79   : > { %452 = vmatprep.subr.bf16.mxu0 %v750_v0  ;;  %469 = vmatprep.subr.bf16.mxu1 %v750_v0 }
  0x7c   : > { %454 = vmatpush1.bf16.msra.mxu0 %v453_v20  ;;  %478 = vmatpush1.bf16.msra.mxu1 %v453_v20 }
  0x7d   : > { %455 = vmatprep.subr.bf16.mxu0 %v750_v0  ;;  %470 = vmatprep.subr.bf16.mxu1 %v750_v0 }
  0x80   : > { %457 = vmatpush1.bf16.msra.mxu0 %v456_v23  ;;  %479 = vmatpush1.bf16.msra.mxu1 %v456_v23 }
  0x81   : > { %458 = vmatprep.subr.bf16.mxu0 %v750_v0  ;;  %471 = vmatprep.subr.bf16.mxu1 %v750_v0 }
  0x84   : > { %460 = vmatpush1.bf16.msra.mxu0 %v459_v26  ;;  %480 = vmatpush1.bf16.msra.mxu1 %v459_v26 }
  0x85   : > { %461 = vmatprep.subr.bf16.mxu0 %v750_v0  ;;  %472 = vmatprep.subr.bf16.mxu1 %v750_v0 }
  0x88   : > { %463 = vmatpush1.bf16.msra.mxu0 %v462_v29  ;;  %481 = vmatpush1.bf16.msra.mxu1 %v462_v29 }
  0x8b   : > { %288 = vmatmul.mubr.f32.vlgmr.msra.gmra.mrb[0].mxu0 %v194_v30  ;;  %293 = vmatmul.mubr.f32.vlgmr.msra.gmra.mrb[0].mxu1 %v196_v31 }
 0x15e   : > { %v289_v32 = vpop.f32.mrb[0].mxu0  ;;  %v294_v33 = vpop.f32.mrb[0].mxu1 }
 0x15f   : > { %vm298_vm1 = vcmp.ge.f32.partialorder %v289_v32, 0.0  ;;  %v300_v34 = vmul.f32 0.01, %v289_v32  ;;  %vm299_vm2 = vcmp.ge.f32.partialorder %v294_v33, 0.0  ;;  %v301_v35 = vmul.f32 0.01, %v294_v33 }
 0x160   : > { %v291_v36 = vpop.f32.mrb[1].mxu0  ;;  %v296_v37 = vpop.f32.mrb[1].mxu1 }
 0x161   : > { %v302_v38 = vsel %vm298_vm1, %v289_v32, %v300_v34  ;;  %v303_v39 = vsel %vm299_vm2, %v294_v33, %v301_v35 }
 0x162   : > { %304 = vst [vmem:[%s193_s25] sm:$0xff] %v302_v38  ;;  %305 = vst [vmem:[%s193_s25 + $0x8] sm:$0xff] %v303_v39 }
 0x163   : > { %653 = shalt.err (!%p650_p9)
}
 0x164   : > { %s654_s6 = scalar_lea.hbm %s995_s13, 256  ;;  %s658_s18 = scalar_lea.hbm %s1051_s2, 1024 }
 0x165   : > { %p655_p2 = scmp.ne.s32.totalorder %s995_s13, %s654_s6  ;;  %p659_p1 = scmp.lt.u32.totalorder %s995_s13, %s1051_s2 }
 0x166   : > { %p660_p4 = scmp.lt.u32.totalorder %s658_s18, %s654_s6  ;;  %p662_p11 = scmp.lt.u32.totalorder %s654_s6, %s995_s13 }
 0x167   : > { %p656_p6 = pnand %p655_p2, %p1079_p13 }
 0x168   : > { %p661_p12 = por %p660_p4, %p659_p1 }
 0x169   : > { %p657_p10 = pneg %p656_p6 }
 0x16a   : > { %p663_p5 = por %p662_p11, %p661_p12 }
 0x16c   : > { %p664_p0 = pnand %p663_p5, %p657_p10 }
 0x16e   : > { %667 = shalt.err (!%p664_p0)
}
 0x16f   : > { %s752_s20 = smov 128   ;;  %s753_s22 = smov 256  }
 0x170   : > { %s754_s25 = smov 8  }
 0x171   : > { %491 = dma.vmem_to_hbm [thread:$0]  (%p1079_p13), %s990_s30, 256, %s995_s13, %s307_s12, %s752_s20, %s753_s22, %s754_s25  }
 0x172 PF: > { %p508_p3 = scmp.ge.s32.totalorder %s742_s16, 2  ;;  %s336_s8 = sand.u32 1, %s714_s9  }
 0x173   : > { %p1080_p7 = scmp.ne.s32.totalorder %s1066_s24, 0  ;;  %s337_s28 = scalar_lea.sflag [#allocation4], %s336_s8 }
 0x175   : > { %p502_p8 = pnand %p508_p3, %p1080_p7 }
 0x177   : > { %709 = dma.done.wait (!%p502_p8), %s337_s28, 256  }
 0x178   : > { %711 = vsyncadd (!%p502_p8), %s337_s28, 4294967040  ;;  %s19_s16 = sadd.s32 1, %s742_s16   ;;  %s1081_s23 = sld [smem:[#allocation11_spill]] }
 0x179   : > { %p16_p9 = scmp.ge.s32.totalorder %s19_s16, 6   ;;  %s1082_s27 = sld [smem:[#allocation12_spill]] }
 0x17a   : > { %s1083_s9 = smov %s718_s10  ;;  %s1084_s10 = smov %s722_s11 }
 0x17b   : > { %s1085_s11 = smov %s903_s3  ;;  %s1086_s12 = smov %s734_s14 }
 0x17c   : > { %s1087_s13 = smov %s738_s15  ;;  %18 = sbr.rel (!%p16_p9) target bundleno = 10 (0xa), region = 78 }
 0x17e   : > { %s1088_s14 = smov %s1081_s23 }
 0x17f   : > { %s1089_s15 = smov %s1082_s27 }
 0x183   :  { %342 = vsyncpa [#allocation3], 1 }
 0x184   :  { %344 = vsyncpa [#allocation3 + $0x1], 1 }
 0x185   :  { %345 = vsyncpa [#allocation6], 1 }
 0x186   :  { %347 = vsyncpa [#allocation6 + $0x1], 1 }
 0x187   :  { %348 = vsyncpa [#allocation4], 1 }
 0x188   :  { %350 = vsyncpa [#allocation4 + $0x1], 1 }

</bundles_post_ra>
